<compile_context>
chip_gen: v6e
topology: v6e:2x2x1
jax: 0.10.0
libtpu: 0.0.40
codegen_flags: <defaults>
</compile_context>

<pallas_src>
import jax
import jax.numpy as jnp
from jax.experimental import pallas as pl
from jax.experimental.pallas import tpu as pltpu

GAMMA = 0.98

_LANES = 128
_SUBLANES = 8
_MIN_BLOCK = _SUBLANES * _LANES      # 1024 elems  -> (8,128)-aligned block
_MAX_BLOCK = 1024 * _LANES           # 131072 elems = 512 KiB f32 per array per block


def _round_up(x, m):
    return ((x + m - 1) // m) * m


# ---------------------------------------------------------------------------
# Scalar path: exact semantics of the PyTorch module (r: float, v_, v: [1, 1]).
# Everything stays on the scalar unit: SMEM in, SMEM out, no VPU / XLU work,
# no masked vector stores, and no wrapper-side packing op.
# ---------------------------------------------------------------------------
def _critic_loss_scalar_kernel(r_ref, v_next_ref, v_ref, out_ref):
    # torch.sum over a [1, 1] tensor is the identity -> plain scalar math.
    out_ref[0] = r_ref[0] + GAMMA * v_next_ref[0] - v_ref[0]


@jax.jit
def critic_loss(r, v_next, v):
    """td_error = r + sum(GAMMA * v_next - v), with v_next / v of shape [1, 1]."""
    r1 = jnp.asarray(r, jnp.float32).reshape(1)
    vn1 = jnp.asarray(v_next, jnp.float32).reshape(1)
    v1 = jnp.asarray(v, jnp.float32).reshape(1)
    smem = pl.BlockSpec(memory_space=pltpu.MemorySpace.SMEM)
    out = pl.pallas_call(
        _critic_loss_scalar_kernel,
        out_shape=jax.ShapeDtypeStruct((1,), jnp.float32),
        in_specs=[smem, smem, smem],
        out_specs=smem,
    )(r1, vn1, v1)
    return out[0]  # in-graph squeeze; same dispatch


# ---------------------------------------------------------------------------
# Batched path: td[i] = r[i] + GAMMA * v_next[i] - v[i] for a whole batch in
# one pallas_call.  Raw 1-D inputs, 1-D lane-aligned blocks, no pad/slice
# copies; the ragged final block is masked by Pallas.
# ---------------------------------------------------------------------------
def _critic_loss_batched_kernel(r_ref, v_next_ref, v_ref, out_ref):
    out_ref[...] = r_ref[...] + GAMMA * v_next_ref[...] - v_ref[...]


@jax.jit
def critic_loss_batched(r, v_next, v):
    """Vectorized TD errors: td[i] = r[i] + GAMMA * v_next[i] - v[i]."""
    r = jnp.asarray(r, jnp.float32).ravel()
    v_next = jnp.asarray(v_next, jnp.float32).ravel()
    v = jnp.asarray(v, jnp.float32).ravel()
    b = r.shape[0]  # static under jit

    # Block sizing: biggest block <= 512 KiB per array (near HBM roofline),
    # but aim for >= 4 grid steps when b is large enough so the "parallel"
    # grid axis can be sharded across v7x's two TensorCores.  Always a
    # multiple of 8*128 so the (8,128) layout constraint is respected.
    block = min(_MAX_BLOCK,
                max(_MIN_BLOCK, _round_up(pl.cdiv(b, 4), _MIN_BLOCK)))
    grid = (pl.cdiv(b, block),)

    spec = pl.BlockSpec((block,), lambda i: (i,))
    return pl.pallas_call(
        _critic_loss_batched_kernel,
        out_shape=jax.ShapeDtypeStruct((b,), jnp.float32),
        grid=grid,
        in_specs=[spec, spec, spec],
        out_specs=spec,
        compiler_params=pltpu.CompilerParams(
            dimension_semantics=("parallel",)),
    )(r, v_next, v)


if __name__ == "__main__":
    key = jax.random.PRNGKey(0)
    k_r, k_vn, k_v, k_b = jax.random.split(key, 4)

    # --- scalar path: shapes exactly as implied by the PyTorch forward() ----
    r = float(jax.random.normal(k_r, ()))                          # reward (float)
    v_next = jax.random.normal(k_vn, (1, 1), dtype=jnp.float32)    # V(s'), shape [1, 1]
    v = jax.random.normal(k_v, (1, 1), dtype=jnp.float32)          # V(s),  shape [1, 1]

    td_error = critic_loss(r, v_next, v)
    jax.block_until_ready(td_error)
    ref = jnp.float32(r) + jnp.sum(GAMMA * v_next - v)
    assert jnp.allclose(td_error, ref, atol=1e-6, rtol=1e-6), (td_error, ref)

    # --- batched path: multi-block grid plus a ragged (masked) final block --
    B = 3000  # not a multiple of the 1024-elem block -> exercises edge masking
    rb, vnb, vb = (jax.random.normal(k, (B,), dtype=jnp.float32)
                   for k in jax.random.split(k_b, 3))
    td_batch = critic_loss_batched(rb, vnb, vb)
    jax.block_until_ready(td_batch)
    ref_batch = rb + GAMMA * vnb - vb
    assert td_batch.shape == (B,)
    assert jnp.allclose(td_batch, ref_batch, atol=1e-5, rtol=1e-5)

    print("KERNEL_OK")
</pallas_src>

<mosaic_0001>
module attributes {stable_mosaic.version = 11 : i64} {
  func.func @_critic_loss_scalar_kernel(%arg0: memref<1xf32, #tpu.memory_space<smem>>, %arg1: memref<1xf32, #tpu.memory_space<smem>>, %arg2: memref<1xf32, #tpu.memory_space<smem>>, %arg3: memref<1xf32, #tpu.memory_space<smem>>) attributes {dimension_semantics = [], scalar_prefetch = 0 : i64, scratch_operands = 0 : i64, tpu.core_type = #tpu.core_type<tc>} {
    %c0 = arith.constant 0 : index
    %0 = memref.load %arg0[%c0] : memref<1xf32, #tpu.memory_space<smem>>
    %c0_0 = arith.constant 0 : index
    %1 = memref.load %arg1[%c0_0] : memref<1xf32, #tpu.memory_space<smem>>
    %cst = arith.constant 9.800000e-01 : f32
    %2 = arith.mulf %cst, %1 : f32
    %3 = arith.addf %0, %2 : f32
    %c0_1 = arith.constant 0 : index
    %4 = memref.load %arg2[%c0_1] : memref<1xf32, #tpu.memory_space<smem>>
    %5 = arith.subf %3, %4 : f32
    %c0_2 = arith.constant 0 : index
    %6 = memref.load %arg3[%c0_2] : memref<1xf32, #tpu.memory_space<smem>>
    memref.store %5, %arg3[%c0_2] : memref<1xf32, #tpu.memory_space<smem>>
    return
  }
}

</mosaic_0001>

<bundles_post_ra>
// kernel: critic_loss.1
= control target key start
LH: loop header
LB: loop body
LE: loop exit
PB: predicated region body
PF: predicated region fallthrough
CT: control target
= control target key end

     0   :  { %11 = vsyncpa [#allocation6], 0  ;;  %s50_s21 = smov [#allocation5]   ;;  %s83_s0 = inlined_call_operand.<no memory space> [shape: f32[1], index: 0, kind: input, shape index: {}]   ;;  %s84_s1 = inlined_call_operand.<no memory space> [shape: f32[1], index: 1, kind: input, shape index: {}]   ;;  %s85_s2 = inlined_call_operand.<no memory space> [shape: f32[1], index: 2, kind: input, shape index: {}]   ;;  %s86_s3 = inlined_call_operand.hbm [shape: f32[1], index: 3, kind: output, shape index: {}]  }
   0x1   :  { %s20_s14 = smul.f32 0.98, %s84_s1 }
   0x3   :  { %s21_s17 = sadd.f32 %s20_s14, %s83_s0 }
   0x5   :  { %s23_s20 = ssub.f32 %s21_s17, %s85_s2 }
   0x7   :  { %25 = sst [smem:[#allocation5]] %s23_s20 }
   0x8   :  { %33 = dma.smem_to_hbm %s50_s21, 16, %s86_s3, [#allocation6]  }
   0x9   :  { %48 = dma.done.wait [#allocation6], 16  }
   0xa   :  { %49 = vsyncadd [#allocation6], 4294967280 }
   0xb   :  { %37 = sfence }
   0xc   :  { %38 = vsyncpa [#allocation6], 1 }

</bundles_post_ra>
